<compile_context>
chip_gen: v7x
topology: tpu7x:2x2x1
jax: 0.10.0
libtpu: 0.0.40
codegen_flags: <defaults>
</compile_context>

<pallas_src>
import jax
import jax.numpy as jnp
from jax.experimental import pallas as pl
from jax.experimental.pallas import tpu as pltpu

IN_FEATURES = 2
HIDDEN = 30
LANES = 128


def _mlp_kernel(w1_ref, b1_ref, w2_ref, c_ref, x_ref, o_ref):
    """y = C + sum_j w2'[j] * tanh(w1'[j,0]*x0 + w1'[j,1]*x1 + b1'[j]).

    w1_ref: SMEM [HIDDEN * IN_FEATURES]  (row-major [hidden, in], pre-scaled by 0.5)
    b1_ref: SMEM [HIDDEN]                (pre-scaled by 0.5)
    w2_ref: SMEM [HIDDEN]                (pre-scaled by 0.5)
    c_ref : SMEM [1]                     (0.5 * sum(w2))
    x_ref : VMEM [IN_FEATURES, block_rows, 128]
    o_ref : VMEM [block_rows, 128]
    """
    x0 = x_ref[0]                      # [block_rows, 128]
    x1 = x_ref[1]                      # [block_rows, 128]
    acc = jnp.zeros_like(x0)
    # 30 scalar-broadcast FMAs on the VPU + exactly one tanh on the EUP per
    # hidden unit; everything stays in registers (<= ~32 live vregs at br=64).
    for j in range(HIDDEN):
        pre = w1_ref[2 * j] * x0 + w1_ref[2 * j + 1] * x1 + b1_ref[j]
        acc = acc + w2_ref[j] * jnp.tanh(pre)
    o_ref[...] = acc + c_ref[0]


def _pick_block_rows(n_rows, cap):
    """Pick an 8-aligned batch-row tile: <=64 rows (no spills, bounded padding
    waste) and small enough to give >=2 grid steps when there is enough work
    (v7x megacore)."""
    cap = max(8, (min(cap, 64) // 8) * 8)
    half = ((n_rows // 2) // 8) * 8          # ~half the batch, 8-aligned
    return min(cap, max(8, half))


def make_pytorch_nn_forward(w1, b1, w2, *, block_rows=64):
    """Build a jitted forward pass; parameter re-layout happens once, here.

    w1: [30, 2]  (PyTorch layout [out_features, in_features])
    b1: [30]
    w2: [1, 30]  (no bias)
    Returned fn maps x: [N, 2] float -> y: [N, 1] float32.
    """
    # Pre-scale parameters once (outside the hot path) for the tanh-form
    # sigmoid; they live in SMEM.
    w1_half = (0.5 * jnp.asarray(w1, jnp.float32)).reshape(HIDDEN * IN_FEATURES)
    b1_half = (0.5 * jnp.asarray(b1, jnp.float32)).reshape(HIDDEN)
    w2_f32 = jnp.asarray(w2, jnp.float32).reshape(HIDDEN)
    w2_half = 0.5 * w2_f32
    c_const = (0.5 * jnp.sum(w2_f32)).reshape(1)

    @jax.jit
    def forward(x):
        n = x.shape[0]
        n_rows = pl.cdiv(n, LANES)                 # rows of 128 batch elems
        br = _pick_block_rows(n_rows, block_rows)
        n_rows_pad = pl.cdiv(n_rows, br) * br
        n_pad = n_rows_pad * LANES

        # Layout plumbing (wrapper-side only): transpose first so the padded
        # axis is the lane-dense one, then pad and fold into [2, rows, 128].
        xt = x.astype(jnp.float32).T                       # [2, N]
        xt = jnp.pad(xt, ((0, 0), (0, n_pad - n)))
        xt = xt.reshape(IN_FEATURES, n_rows_pad, LANES)

        smem_spec = pl.BlockSpec(memory_space=pltpu.MemorySpace.SMEM)
        out = pl.pallas_call(
            _mlp_kernel,
            out_shape=jax.ShapeDtypeStruct((n_rows_pad, LANES), jnp.float32),
            grid=(n_rows_pad // br,),
            in_specs=[
                smem_spec,                                         # w1'
                smem_spec,                                         # b1'
                smem_spec,                                         # w2'
                smem_spec,                                         # C
                pl.BlockSpec((IN_FEATURES, br, LANES),
                             lambda i: (0, i, 0)),                 # x tile
            ],
            out_specs=pl.BlockSpec((br, LANES), lambda i: (i, 0)),
            compiler_params=pltpu.CompilerParams(
                dimension_semantics=("parallel",)),
        )(w1_half, b1_half, w2_half, c_const, xt)

        # Back to the PyTorch output shape [N, 1].
        return out.reshape(n_pad)[:n].reshape(n, 1)

    return forward


def _init_params(key):
    # Deterministic init mimicking PyTorch nn.Linear default:
    # U(-1/sqrt(fan_in), 1/sqrt(fan_in))
    k1, k2, k3 = jax.random.split(key, 3)
    bound1 = 1.0 / jnp.sqrt(2.0)
    w1 = jax.random.uniform(k1, (HIDDEN, IN_FEATURES), jnp.float32, -bound1, bound1)
    b1 = jax.random.uniform(k2, (HIDDEN,), jnp.float32, -bound1, bound1)
    bound2 = 1.0 / jnp.sqrt(float(HIDDEN))
    w2 = jax.random.uniform(k3, (1, HIDDEN), jnp.float32, -bound2, bound2)
    return w1, b1, w2


def _reference(x, w1, b1, w2):
    return jax.nn.sigmoid(x @ w1.T + b1) @ w2.T


if __name__ == "__main__":
    key = jax.random.PRNGKey(0)
    k_x, k_x2, k_p = jax.random.split(key, 3)
    w1, b1, w2 = _init_params(k_p)
    forward = make_pytorch_nn_forward(w1, b1, w2)

    # Small case (single tile).
    batch = 8
    x = jax.random.normal(k_x, (batch, IN_FEATURES), jnp.float32)
    y = jax.block_until_ready(forward(x))
    y_ref = _reference(x, w1, b1, w2)
    assert y.shape == (batch, 1)
    assert jnp.allclose(y, y_ref, atol=1e-4, rtol=1e-4)

    # Moderate case exercising the batch grid + padding (multi-tile grid).
    batch2 = 3000
    x2 = jax.random.normal(k_x2, (batch2, IN_FEATURES), jnp.float32)
    y2 = jax.block_until_ready(forward(x2))
    y2_ref = _reference(x2, w1, b1, w2)
    assert y2.shape == (batch2, 1)
    assert jnp.allclose(y2, y2_ref, atol=1e-4, rtol=1e-4)

    print("KERNEL_OK")
</pallas_src>

<mosaic_0001>
module attributes {stable_mosaic.version = 11 : i64} {
  func.func @_mlp_kernel(%arg0: i32, %arg1: memref<60xf32, #tpu.memory_space<smem>>, %arg2: memref<30xf32, #tpu.memory_space<smem>>, %arg3: memref<30xf32, #tpu.memory_space<smem>>, %arg4: memref<1xf32, #tpu.memory_space<smem>>, %arg5: memref<2x8x128xf32, #tpu.memory_space<vmem>>, %arg6: memref<8x128xf32, #tpu.memory_space<vmem>>) attributes {dimension_semantics = [#tpu.dimension_semantics<parallel>], iteration_bounds = array<i64: 1>, scalar_prefetch = 0 : i64, scratch_operands = 0 : i64, tpu.core_type = #tpu.core_type<tc>, window_params = [{transform_indices = @transform_0, window_bounds = array<i64: 60>}, {transform_indices = @transform_1, window_bounds = array<i64: 30>}, {transform_indices = @transform_2, window_bounds = array<i64: 30>}, {transform_indices = @transform_3, window_bounds = array<i64: 1>}, {transform_indices = @transform_4, window_bounds = array<i64: 2, 8, 128>}, {transform_indices = @transform_5, window_bounds = array<i64: 8, 128>}]} {
    %c0 = arith.constant 0 : index
    %c0_0 = arith.constant 0 : index
    %c0_1 = arith.constant 0 : index
    %0 = vector.load %arg5[%c0, %c0_0, %c0_1] : memref<2x8x128xf32, #tpu.memory_space<vmem>>, vector<1x8x128xf32>
    %1 = vector.shape_cast %0 : vector<1x8x128xf32> to vector<8x128xf32>
    %c1 = arith.constant 1 : index
    %c0_2 = arith.constant 0 : index
    %c0_3 = arith.constant 0 : index
    %2 = vector.load %arg5[%c1, %c0_2, %c0_3] : memref<2x8x128xf32, #tpu.memory_space<vmem>>, vector<1x8x128xf32>
    %3 = vector.shape_cast %2 : vector<1x8x128xf32> to vector<8x128xf32>
    %cst = arith.constant 0.000000e+00 : f32
    %4 = vector.broadcast %cst : f32 to vector<8x128xf32>
    %c0_4 = arith.constant 0 : index
    %5 = memref.load %arg1[%c0_4] : memref<60xf32, #tpu.memory_space<smem>>
    %6 = vector.broadcast %5 : f32 to vector<8x128xf32>
    %7 = arith.mulf %6, %1 : vector<8x128xf32>
    %c1_5 = arith.constant 1 : index
    %8 = memref.load %arg1[%c1_5] : memref<60xf32, #tpu.memory_space<smem>>
    %9 = vector.broadcast %8 : f32 to vector<8x128xf32>
    %10 = arith.mulf %9, %3 : vector<8x128xf32>
    %11 = arith.addf %7, %10 : vector<8x128xf32>
    %c0_6 = arith.constant 0 : index
    %12 = memref.load %arg2[%c0_6] : memref<30xf32, #tpu.memory_space<smem>>
    %13 = vector.broadcast %12 : f32 to vector<8x128xf32>
    %14 = arith.addf %11, %13 : vector<8x128xf32>
    %c0_7 = arith.constant 0 : index
    %15 = memref.load %arg3[%c0_7] : memref<30xf32, #tpu.memory_space<smem>>
    %16 = math.tanh %14 : vector<8x128xf32>
    %17 = vector.broadcast %15 : f32 to vector<8x128xf32>
    %18 = arith.mulf %17, %16 : vector<8x128xf32>
    %19 = arith.addf %4, %18 : vector<8x128xf32>
    %c2 = arith.constant 2 : index
    %20 = memref.load %arg1[%c2] : memref<60xf32, #tpu.memory_space<smem>>
    %21 = vector.broadcast %20 : f32 to vector<8x128xf32>
    %22 = arith.mulf %21, %1 : vector<8x128xf32>
    %c3 = arith.constant 3 : index
    %23 = memref.load %arg1[%c3] : memref<60xf32, #tpu.memory_space<smem>>
    %24 = vector.broadcast %23 : f32 to vector<8x128xf32>
    %25 = arith.mulf %24, %3 : vector<8x128xf32>
    %26 = arith.addf %22, %25 : vector<8x128xf32>
    %c1_8 = arith.constant 1 : index
    %27 = memref.load %arg2[%c1_8] : memref<30xf32, #tpu.memory_space<smem>>
    %28 = vector.broadcast %27 : f32 to vector<8x128xf32>
    %29 = arith.addf %26, %28 : vector<8x128xf32>
    %c1_9 = arith.constant 1 : index
    %30 = memref.load %arg3[%c1_9] : memref<30xf32, #tpu.memory_space<smem>>
    %31 = math.tanh %29 : vector<8x128xf32>
    %32 = vector.broadcast %30 : f32 to vector<8x128xf32>
    %33 = arith.mulf %32, %31 : vector<8x128xf32>
    %34 = arith.addf %19, %33 : vector<8x128xf32>
    %c4 = arith.constant 4 : index
    %35 = memref.load %arg1[%c4] : memref<60xf32, #tpu.memory_space<smem>>
    %36 = vector.broadcast %35 : f32 to vector<8x128xf32>
    %37 = arith.mulf %36, %1 : vector<8x128xf32>
    %c5 = arith.constant 5 : index
    %38 = memref.load %arg1[%c5] : memref<60xf32, #tpu.memory_space<smem>>
    %39 = vector.broadcast %38 : f32 to vector<8x128xf32>
    %40 = arith.mulf %39, %3 : vector<8x128xf32>
    %41 = arith.addf %37, %40 : vector<8x128xf32>
    %c2_10 = arith.constant 2 : index
    %42 = memref.load %arg2[%c2_10] : memref<30xf32, #tpu.memory_space<smem>>
    %43 = vector.broadcast %42 : f32 to vector<8x128xf32>
    %44 = arith.addf %41, %43 : vector<8x128xf32>
    %c2_11 = arith.constant 2 : index
    %45 = memref.load %arg3[%c2_11] : memref<30xf32, #tpu.memory_space<smem>>
    %46 = math.tanh %44 : vector<8x128xf32>
    %47 = vector.broadcast %45 : f32 to vector<8x128xf32>
    %48 = arith.mulf %47, %46 : vector<8x128xf32>
    %49 = arith.addf %34, %48 : vector<8x128xf32>
    %c6 = arith.constant 6 : index
    %50 = memref.load %arg1[%c6] : memref<60xf32, #tpu.memory_space<smem>>
    %51 = vector.broadcast %50 : f32 to vector<8x128xf32>
    %52 = arith.mulf %51, %1 : vector<8x128xf32>
    %c7 = arith.constant 7 : index
    %53 = memref.load %arg1[%c7] : memref<60xf32, #tpu.memory_space<smem>>
    %54 = vector.broadcast %53 : f32 to vector<8x128xf32>
    %55 = arith.mulf %54, %3 : vector<8x128xf32>
    %56 = arith.addf %52, %55 : vector<8x128xf32>
    %c3_12 = arith.constant 3 : index
    %57 = memref.load %arg2[%c3_12] : memref<30xf32, #tpu.memory_space<smem>>
    %58 = vector.broadcast %57 : f32 to vector<8x128xf32>
    %59 = arith.addf %56, %58 : vector<8x128xf32>
    %c3_13 = arith.constant 3 : index
    %60 = memref.load %arg3[%c3_13] : memref<30xf32, #tpu.memory_space<smem>>
    %61 = math.tanh %59 : vector<8x128xf32>
    %62 = vector.broadcast %60 : f32 to vector<8x128xf32>
    %63 = arith.mulf %62, %61 : vector<8x128xf32>
    %64 = arith.addf %49, %63 : vector<8x128xf32>
    %c8 = arith.constant 8 : index
    %65 = memref.load %arg1[%c8] : memref<60xf32, #tpu.memory_space<smem>>
    %66 = vector.broadcast %65 : f32 to vector<8x128xf32>
    %67 = arith.mulf %66, %1 : vector<8x128xf32>
    %c9 = arith.constant 9 : index
    %68 = memref.load %arg1[%c9] : memref<60xf32, #tpu.memory_space<smem>>
    %69 = vector.broadcast %68 : f32 to vector<8x128xf32>
    %70 = arith.mulf %69, %3 : vector<8x128xf32>
    %71 = arith.addf %67, %70 : vector<8x128xf32>
    %c4_14 = arith.constant 4 : index
    %72 = memref.load %arg2[%c4_14] : memref<30xf32, #tpu.memory_space<smem>>
    %73 = vector.broadcast %72 : f32 to vector<8x128xf32>
    %74 = arith.addf %71, %73 : vector<8x128xf32>
    %c4_15 = arith.constant 4 : index
    %75 = memref.load %arg3[%c4_15] : memref<30xf32, #tpu.memory_space<smem>>
    %76 = math.tanh %74 : vector<8x128xf32>
    %77 = vector.broadcast %75 : f32 to vector<8x128xf32>
    %78 = arith.mulf %77, %76 : vector<8x128xf32>
    %79 = arith.addf %64, %78 : vector<8x128xf32>
    %c10 = arith.constant 10 : index
    %80 = memref.load %arg1[%c10] : memref<60xf32, #tpu.memory_space<smem>>
    %81 = vector.broadcast %80 : f32 to vector<8x128xf32>
    %82 = arith.mulf %81, %1 : vector<8x128xf32>
    %c11 = arith.constant 11 : index
    %83 = memref.load %arg1[%c11] : memref<60xf32, #tpu.memory_space<smem>>
    %84 = vector.broadcast %83 : f32 to vector<8x128xf32>
    %85 = arith.mulf %84, %3 : vector<8x128xf32>
    %86 = arith.addf %82, %85 : vector<8x128xf32>
    %c5_16 = arith.constant 5 : index
    %87 = memref.load %arg2[%c5_16] : memref<30xf32, #tpu.memory_space<smem>>
    %88 = vector.broadcast %87 : f32 to vector<8x128xf32>
    %89 = arith.addf %86, %88 : vector<8x128xf32>
    %c5_17 = arith.constant 5 : index
    %90 = memref.load %arg3[%c5_17] : memref<30xf32, #tpu.memory_space<smem>>
    %91 = math.tanh %89 : vector<8x128xf32>
    %92 = vector.broadcast %90 : f32 to vector<8x128xf32>
    %93 = arith.mulf %92, %91 : vector<8x128xf32>
    %94 = arith.addf %79, %93 : vector<8x128xf32>
    %c12 = arith.constant 12 : index
    %95 = memref.load %arg1[%c12] : memref<60xf32, #tpu.memory_space<smem>>
    %96 = vector.broadcast %95 : f32 to vector<8x128xf32>
    %97 = arith.mulf %96, %1 : vector<8x128xf32>
    %c13 = arith.constant 13 : index
    %98 = memref.load %arg1[%c13] : memref<60xf32, #tpu.memory_space<smem>>
    %99 = vector.broadcast %98 : f32 to vector<8x128xf32>
    %100 = arith.mulf %99, %3 : vector<8x128xf32>
    %101 = arith.addf %97, %100 : vector<8x128xf32>
    %c6_18 = arith.constant 6 : index
    %102 = memref.load %arg2[%c6_18] : memref<30xf32, #tpu.memory_space<smem>>
    %103 = vector.broadcast %102 : f32 to vector<8x128xf32>
    %104 = arith.addf %101, %103 : vector<8x128xf32>
    %c6_19 = arith.constant 6 : index
    %105 = memref.load %arg3[%c6_19] : memref<30xf32, #tpu.memory_space<smem>>
    %106 = math.tanh %104 : vector<8x128xf32>
    %107 = vector.broadcast %105 : f32 to vector<8x128xf32>
    %108 = arith.mulf %107, %106 : vector<8x128xf32>
    %109 = arith.addf %94, %108 : vector<8x128xf32>
    %c14 = arith.constant 14 : index
    %110 = memref.load %arg1[%c14] : memref<60xf32, #tpu.memory_space<smem>>
    %111 = vector.broadcast %110 : f32 to vector<8x128xf32>
    %112 = arith.mulf %111, %1 : vector<8x128xf32>
    %c15 = arith.constant 15 : index
    %113 = memref.load %arg1[%c15] : memref<60xf32, #tpu.memory_space<smem>>
    %114 = vector.broadcast %113 : f32 to vector<8x128xf32>
    %115 = arith.mulf %114, %3 : vector<8x128xf32>
    %116 = arith.addf %112, %115 : vector<8x128xf32>
    %c7_20 = arith.constant 7 : index
    %117 = memref.load %arg2[%c7_20] : memref<30xf32, #tpu.memory_space<smem>>
    %118 = vector.broadcast %117 : f32 to vector<8x128xf32>
    %119 = arith.addf %116, %118 : vector<8x128xf32>
    %c7_21 = arith.constant 7 : index
    %120 = memref.load %arg3[%c7_21] : memref<30xf32, #tpu.memory_space<smem>>
    %121 = math.tanh %119 : vector<8x128xf32>
    %122 = vector.broadcast %120 : f32 to vector<8x128xf32>
    %123 = arith.mulf %122, %121 : vector<8x128xf32>
    %124 = arith.addf %109, %123 : vector<8x128xf32>
    %c16 = arith.constant 16 : index
    %125 = memref.load %arg1[%c16] : memref<60xf32, #tpu.memory_space<smem>>
    %126 = vector.broadcast %125 : f32 to vector<8x128xf32>
    %127 = arith.mulf %126, %1 : vector<8x128xf32>
    %c17 = arith.constant 17 : index
    %128 = memref.load %arg1[%c17] : memref<60xf32, #tpu.memory_space<smem>>
    %129 = vector.broadcast %128 : f32 to vector<8x128xf32>
    %130 = arith.mulf %129, %3 : vector<8x128xf32>
    %131 = arith.addf %127, %130 : vector<8x128xf32>
    %c8_22 = arith.constant 8 : index
    %132 = memref.load %arg2[%c8_22] : memref<30xf32, #tpu.memory_space<smem>>
    %133 = vector.broadcast %132 : f32 to vector<8x128xf32>
    %134 = arith.addf %131, %133 : vector<8x128xf32>
    %c8_23 = arith.constant 8 : index
    %135 = memref.load %arg3[%c8_23] : memref<30xf32, #tpu.memory_space<smem>>
    %136 = math.tanh %134 : vector<8x128xf32>
    %137 = vector.broadcast %135 : f32 to vector<8x128xf32>
    %138 = arith.mulf %137, %136 : vector<8x128xf32>
    %139 = arith.addf %124, %138 : vector<8x128xf32>
    %c18 = arith.constant 18 : index
    %140 = memref.load %arg1[%c18] : memref<60xf32, #tpu.memory_space<smem>>
    %141 = vector.broadcast %140 : f32 to vector<8x128xf32>
    %142 = arith.mulf %141, %1 : vector<8x128xf32>
    %c19 = arith.constant 19 : index
    %143 = memref.load %arg1[%c19] : memref<60xf32, #tpu.memory_space<smem>>
    %144 = vector.broadcast %143 : f32 to vector<8x128xf32>
    %145 = arith.mulf %144, %3 : vector<8x128xf32>
    %146 = arith.addf %142, %145 : vector<8x128xf32>
    %c9_24 = arith.constant 9 : index
    %147 = memref.load %arg2[%c9_24] : memref<30xf32, #tpu.memory_space<smem>>
    %148 = vector.broadcast %147 : f32 to vector<8x128xf32>
    %149 = arith.addf %146, %148 : vector<8x128xf32>
    %c9_25 = arith.constant 9 : index
    %150 = memref.load %arg3[%c9_25] : memref<30xf32, #tpu.memory_space<smem>>
    %151 = math.tanh %149 : vector<8x128xf32>
    %152 = vector.broadcast %150 : f32 to vector<8x128xf32>
    %153 = arith.mulf %152, %151 : vector<8x128xf32>
    %154 = arith.addf %139, %153 : vector<8x128xf32>
    %c20 = arith.constant 20 : index
    %155 = memref.load %arg1[%c20] : memref<60xf32, #tpu.memory_space<smem>>
    %156 = vector.broadcast %155 : f32 to vector<8x128xf32>
    %157 = arith.mulf %156, %1 : vector<8x128xf32>
    %c21 = arith.constant 21 : index
    %158 = memref.load %arg1[%c21] : memref<60xf32, #tpu.memory_space<smem>>
    %159 = vector.broadcast %158 : f32 to vector<8x128xf32>
    %160 = arith.mulf %159, %3 : vector<8x128xf32>
    %161 = arith.addf %157, %160 : vector<8x128xf32>
    %c10_26 = arith.constant 10 : index
    %162 = memref.load %arg2[%c10_26] : memref<30xf32, #tpu.memory_space<smem>>
    %163 = vector.broadcast %162 : f32 to vector<8x128xf32>
    %164 = arith.addf %161, %163 : vector<8x128xf32>
    %c10_27 = arith.constant 10 : index
    %165 = memref.load %arg3[%c10_27] : memref<30xf32, #tpu.memory_space<smem>>
    %166 = math.tanh %164 : vector<8x128xf32>
    %167 = vector.broadcast %165 : f32 to vector<8x128xf32>
    %168 = arith.mulf %167, %166 : vector<8x128xf32>
    %169 = arith.addf %154, %168 : vector<8x128xf32>
    %c22 = arith.constant 22 : index
    %170 = memref.load %arg1[%c22] : memref<60xf32, #tpu.memory_space<smem>>
    %171 = vector.broadcast %170 : f32 to vector<8x128xf32>
    %172 = arith.mulf %171, %1 : vector<8x128xf32>
    %c23 = arith.constant 23 : index
    %173 = memref.load %arg1[%c23] : memref<60xf32, #tpu.memory_space<smem>>
    %174 = vector.broadcast %173 : f32 to vector<8x128xf32>
    %175 = arith.mulf %174, %3 : vector<8x128xf32>
    %176 = arith.addf %172, %175 : vector<8x128xf32>
    %c11_28 = arith.constant 11 : index
    %177 = memref.load %arg2[%c11_28] : memref<30xf32, #tpu.memory_space<smem>>
    %178 = vector.broadcast %177 : f32 to vector<8x128xf32>
    %179 = arith.addf %176, %178 : vector<8x128xf32>
    %c11_29 = arith.constant 11 : index
    %180 = memref.load %arg3[%c11_29] : memref<30xf32, #tpu.memory_space<smem>>
    %181 = math.tanh %179 : vector<8x128xf32>
    %182 = vector.broadcast %180 : f32 to vector<8x128xf32>
    %183 = arith.mulf %182, %181 : vector<8x128xf32>
    %184 = arith.addf %169, %183 : vector<8x128xf32>
    %c24 = arith.constant 24 : index
    %185 = memref.load %arg1[%c24] : memref<60xf32, #tpu.memory_space<smem>>
    %186 = vector.broadcast %185 : f32 to vector<8x128xf32>
    %187 = arith.mulf %186, %1 : vector<8x128xf32>
    %c25 = arith.constant 25 : index
    %188 = memref.load %arg1[%c25] : memref<60xf32, #tpu.memory_space<smem>>
    %189 = vector.broadcast %188 : f32 to vector<8x128xf32>
    %190 = arith.mulf %189, %3 : vector<8x128xf32>
    %191 = arith.addf %187, %190 : vector<8x128xf32>
    %c12_30 = arith.constant 12 : index
    %192 = memref.load %arg2[%c12_30] : memref<30xf32, #tpu.memory_space<smem>>
    %193 = vector.broadcast %192 : f32 to vector<8x128xf32>
    %194 = arith.addf %191, %193 : vector<8x128xf32>
    %c12_31 = arith.constant 12 : index
    %195 = memref.load %arg3[%c12_31] : memref<30xf32, #tpu.memory_space<smem>>
    %196 = math.tanh %194 : vector<8x128xf32>
    %197 = vector.broadcast %195 : f32 to vector<8x128xf32>
    %198 = arith.mulf %197, %196 : vector<8x128xf32>
    %199 = arith.addf %184, %198 : vector<8x128xf32>
    %c26 = arith.constant 26 : index
    %200 = memref.load %arg1[%c26] : memref<60xf32, #tpu.memory_space<smem>>
    %201 = vector.broadcast %200 : f32 to vector<8x128xf32>
    %202 = arith.mulf %201, %1 : vector<8x128xf32>
    %c27 = arith.constant 27 : index
    %203 = memref.load %arg1[%c27] : memref<60xf32, #tpu.memory_space<smem>>
    %204 = vector.broadcast %203 : f32 to vector<8x128xf32>
    %205 = arith.mulf %204, %3 : vector<8x128xf32>
    %206 = arith.addf %202, %205 : vector<8x128xf32>
    %c13_32 = arith.constant 13 : index
    %207 = memref.load %arg2[%c13_32] : memref<30xf32, #tpu.memory_space<smem>>
    %208 = vector.broadcast %207 : f32 to vector<8x128xf32>
    %209 = arith.addf %206, %208 : vector<8x128xf32>
    %c13_33 = arith.constant 13 : index
    %210 = memref.load %arg3[%c13_33] : memref<30xf32, #tpu.memory_space<smem>>
    %211 = math.tanh %209 : vector<8x128xf32>
    %212 = vector.broadcast %210 : f32 to vector<8x128xf32>
    %213 = arith.mulf %212, %211 : vector<8x128xf32>
    %214 = arith.addf %199, %213 : vector<8x128xf32>
    %c28 = arith.constant 28 : index
    %215 = memref.load %arg1[%c28] : memref<60xf32, #tpu.memory_space<smem>>
    %216 = vector.broadcast %215 : f32 to vector<8x128xf32>
    %217 = arith.mulf %216, %1 : vector<8x128xf32>
    %c29 = arith.constant 29 : index
    %218 = memref.load %arg1[%c29] : memref<60xf32, #tpu.memory_space<smem>>
    %219 = vector.broadcast %218 : f32 to vector<8x128xf32>
    %220 = arith.mulf %219, %3 : vector<8x128xf32>
    %221 = arith.addf %217, %220 : vector<8x128xf32>
    %c14_34 = arith.constant 14 : index
    %222 = memref.load %arg2[%c14_34] : memref<30xf32, #tpu.memory_space<smem>>
    %223 = vector.broadcast %222 : f32 to vector<8x128xf32>
    %224 = arith.addf %221, %223 : vector<8x128xf32>
    %c14_35 = arith.constant 14 : index
    %225 = memref.load %arg3[%c14_35] : memref<30xf32, #tpu.memory_space<smem>>
    %226 = math.tanh %224 : vector<8x128xf32>
    %227 = vector.broadcast %225 : f32 to vector<8x128xf32>
    %228 = arith.mulf %227, %226 : vector<8x128xf32>
    %229 = arith.addf %214, %228 : vector<8x128xf32>
    %c30 = arith.constant 30 : index
    %230 = memref.load %arg1[%c30] : memref<60xf32, #tpu.memory_space<smem>>
    %231 = vector.broadcast %230 : f32 to vector<8x128xf32>
    %232 = arith.mulf %231, %1 : vector<8x128xf32>
    %c31 = arith.constant 31 : index
    %233 = memref.load %arg1[%c31] : memref<60xf32, #tpu.memory_space<smem>>
    %234 = vector.broadcast %233 : f32 to vector<8x128xf32>
    %235 = arith.mulf %234, %3 : vector<8x128xf32>
    %236 = arith.addf %232, %235 : vector<8x128xf32>
    %c15_36 = arith.constant 15 : index
    %237 = memref.load %arg2[%c15_36] : memref<30xf32, #tpu.memory_space<smem>>
    %238 = vector.broadcast %237 : f32 to vector<8x128xf32>
    %239 = arith.addf %236, %238 : vector<8x128xf32>
    %c15_37 = arith.constant 15 : index
    %240 = memref.load %arg3[%c15_37] : memref<30xf32, #tpu.memory_space<smem>>
    %241 = math.tanh %239 : vector<8x128xf32>
    %242 = vector.broadcast %240 : f32 to vector<8x128xf32>
    %243 = arith.mulf %242, %241 : vector<8x128xf32>
    %244 = arith.addf %229, %243 : vector<8x128xf32>
    %c32 = arith.constant 32 : index
    %245 = memref.load %arg1[%c32] : memref<60xf32, #tpu.memory_space<smem>>
    %246 = vector.broadcast %245 : f32 to vector<8x128xf32>
    %247 = arith.mulf %246, %1 : vector<8x128xf32>
    %c33 = arith.constant 33 : index
    %248 = memref.load %arg1[%c33] : memref<60xf32, #tpu.memory_space<smem>>
    %249 = vector.broadcast %248 : f32 to vector<8x128xf32>
    %250 = arith.mulf %249, %3 : vector<8x128xf32>
    %251 = arith.addf %247, %250 : vector<8x128xf32>
    %c16_38 = arith.constant 16 : index
    %252 = memref.load %arg2[%c16_38] : memref<30xf32, #tpu.memory_space<smem>>
    %253 = vector.broadcast %252 : f32 to vector<8x128xf32>
    %254 = arith.addf %251, %253 : vector<8x128xf32>
    %c16_39 = arith.constant 16 : index
    %255 = memref.load %arg3[%c16_39] : memref<30xf32, #tpu.memory_space<smem>>
    %256 = math.tanh %254 : vector<8x128xf32>
    %257 = vector.broadcast %255 : f32 to vector<8x128xf32>
    %258 = arith.mulf %257, %256 : vector<8x128xf32>
    %259 = arith.addf %244, %258 : vector<8x128xf32>
    %c34 = arith.constant 34 : index
    %260 = memref.load %arg1[%c34] : memref<60xf32, #tpu.memory_space<smem>>
    %261 = vector.broadcast %260 : f32 to vector<8x128xf32>
    %262 = arith.mulf %261, %1 : vector<8x128xf32>
    %c35 = arith.constant 35 : index
    %263 = memref.load %arg1[%c35] : memref<60xf32, #tpu.memory_space<smem>>
    %264 = vector.broadcast %263 : f32 to vector<8x128xf32>
    %265 = arith.mulf %264, %3 : vector<8x128xf32>
    %266 = arith.addf %262, %265 : vector<8x128xf32>
    %c17_40 = arith.constant 17 : index
    %267 = memref.load %arg2[%c17_40] : memref<30xf32, #tpu.memory_space<smem>>
    %268 = vector.broadcast %267 : f32 to vector<8x128xf32>
    %269 = arith.addf %266, %268 : vector<8x128xf32>
    %c17_41 = arith.constant 17 : index
    %270 = memref.load %arg3[%c17_41] : memref<30xf32, #tpu.memory_space<smem>>
    %271 = math.tanh %269 : vector<8x128xf32>
    %272 = vector.broadcast %270 : f32 to vector<8x128xf32>
    %273 = arith.mulf %272, %271 : vector<8x128xf32>
    %274 = arith.addf %259, %273 : vector<8x128xf32>
    %c36 = arith.constant 36 : index
    %275 = memref.load %arg1[%c36] : memref<60xf32, #tpu.memory_space<smem>>
    %276 = vector.broadcast %275 : f32 to vector<8x128xf32>
    %277 = arith.mulf %276, %1 : vector<8x128xf32>
    %c37 = arith.constant 37 : index
    %278 = memref.load %arg1[%c37] : memref<60xf32, #tpu.memory_space<smem>>
    %279 = vector.broadcast %278 : f32 to vector<8x128xf32>
    %280 = arith.mulf %279, %3 : vector<8x128xf32>
    %281 = arith.addf %277, %280 : vector<8x128xf32>
    %c18_42 = arith.constant 18 : index
    %282 = memref.load %arg2[%c18_42] : memref<30xf32, #tpu.memory_space<smem>>
    %283 = vector.broadcast %282 : f32 to vector<8x128xf32>
    %284 = arith.addf %281, %283 : vector<8x128xf32>
    %c18_43 = arith.constant 18 : index
    %285 = memref.load %arg3[%c18_43] : memref<30xf32, #tpu.memory_space<smem>>
    %286 = math.tanh %284 : vector<8x128xf32>
    %287 = vector.broadcast %285 : f32 to vector<8x128xf32>
    %288 = arith.mulf %287, %286 : vector<8x128xf32>
    %289 = arith.addf %274, %288 : vector<8x128xf32>
    %c38 = arith.constant 38 : index
    %290 = memref.load %arg1[%c38] : memref<60xf32, #tpu.memory_space<smem>>
    %291 = vector.broadcast %290 : f32 to vector<8x128xf32>
    %292 = arith.mulf %291, %1 : vector<8x128xf32>
    %c39 = arith.constant 39 : index
    %293 = memref.load %arg1[%c39] : memref<60xf32, #tpu.memory_space<smem>>
    %294 = vector.broadcast %293 : f32 to vector<8x128xf32>
    %295 = arith.mulf %294, %3 : vector<8x128xf32>
    %296 = arith.addf %292, %295 : vector<8x128xf32>
    %c19_44 = arith.constant 19 : index
    %297 = memref.load %arg2[%c19_44] : memref<30xf32, #tpu.memory_space<smem>>
    %298 = vector.broadcast %297 : f32 to vector<8x128xf32>
    %299 = arith.addf %296, %298 : vector<8x128xf32>
    %c19_45 = arith.constant 19 : index
    %300 = memref.load %arg3[%c19_45] : memref<30xf32, #tpu.memory_space<smem>>
    %301 = math.tanh %299 : vector<8x128xf32>
    %302 = vector.broadcast %300 : f32 to vector<8x128xf32>
    %303 = arith.mulf %302, %301 : vector<8x128xf32>
    %304 = arith.addf %289, %303 : vector<8x128xf32>
    %c40 = arith.constant 40 : index
    %305 = memref.load %arg1[%c40] : memref<60xf32, #tpu.memory_space<smem>>
    %306 = vector.broadcast %305 : f32 to vector<8x128xf32>
    %307 = arith.mulf %306, %1 : vector<8x128xf32>
    %c41 = arith.constant 41 : index
    %308 = memref.load %arg1[%c41] : memref<60xf32, #tpu.memory_space<smem>>
    %309 = vector.broadcast %308 : f32 to vector<8x128xf32>
    %310 = arith.mulf %309, %3 : vector<8x128xf32>
    %311 = arith.addf %307, %310 : vector<8x128xf32>
    %c20_46 = arith.constant 20 : index
    %312 = memref.load %arg2[%c20_46] : memref<30xf32, #tpu.memory_space<smem>>
    %313 = vector.broadcast %312 : f32 to vector<8x128xf32>
    %314 = arith.addf %311, %313 : vector<8x128xf32>
    %c20_47 = arith.constant 20 : index
    %315 = memref.load %arg3[%c20_47] : memref<30xf32, #tpu.memory_space<smem>>
    %316 = math.tanh %314 : vector<8x128xf32>
    %317 = vector.broadcast %315 : f32 to vector<8x128xf32>
    %318 = arith.mulf %317, %316 : vector<8x128xf32>
    %319 = arith.addf %304, %318 : vector<8x128xf32>
    %c42 = arith.constant 42 : index
    %320 = memref.load %arg1[%c42] : memref<60xf32, #tpu.memory_space<smem>>
    %321 = vector.broadcast %320 : f32 to vector<8x128xf32>
    %322 = arith.mulf %321, %1 : vector<8x128xf32>
    %c43 = arith.constant 43 : index
    %323 = memref.load %arg1[%c43] : memref<60xf32, #tpu.memory_space<smem>>
    %324 = vector.broadcast %323 : f32 to vector<8x128xf32>
    %325 = arith.mulf %324, %3 : vector<8x128xf32>
    %326 = arith.addf %322, %325 : vector<8x128xf32>
    %c21_48 = arith.constant 21 : index
    %327 = memref.load %arg2[%c21_48] : memref<30xf32, #tpu.memory_space<smem>>
    %328 = vector.broadcast %327 : f32 to vector<8x128xf32>
    %329 = arith.addf %326, %328 : vector<8x128xf32>
    %c21_49 = arith.constant 21 : index
    %330 = memref.load %arg3[%c21_49] : memref<30xf32, #tpu.memory_space<smem>>
    %331 = math.tanh %329 : vector<8x128xf32>
    %332 = vector.broadcast %330 : f32 to vector<8x128xf32>
    %333 = arith.mulf %332, %331 : vector<8x128xf32>
    %334 = arith.addf %319, %333 : vector<8x128xf32>
    %c44 = arith.constant 44 : index
    %335 = memref.load %arg1[%c44] : memref<60xf32, #tpu.memory_space<smem>>
    %336 = vector.broadcast %335 : f32 to vector<8x128xf32>
    %337 = arith.mulf %336, %1 : vector<8x128xf32>
    %c45 = arith.constant 45 : index
    %338 = memref.load %arg1[%c45] : memref<60xf32, #tpu.memory_space<smem>>
    %339 = vector.broadcast %338 : f32 to vector<8x128xf32>
    %340 = arith.mulf %339, %3 : vector<8x128xf32>
    %341 = arith.addf %337, %340 : vector<8x128xf32>
    %c22_50 = arith.constant 22 : index
    %342 = memref.load %arg2[%c22_50] : memref<30xf32, #tpu.memory_space<smem>>
    %343 = vector.broadcast %342 : f32 to vector<8x128xf32>
    %344 = arith.addf %341, %343 : vector<8x128xf32>
    %c22_51 = arith.constant 22 : index
    %345 = memref.load %arg3[%c22_51] : memref<30xf32, #tpu.memory_space<smem>>
    %346 = math.tanh %344 : vector<8x128xf32>
    %347 = vector.broadcast %345 : f32 to vector<8x128xf32>
    %348 = arith.mulf %347, %346 : vector<8x128xf32>
    %349 = arith.addf %334, %348 : vector<8x128xf32>
    %c46 = arith.constant 46 : index
    %350 = memref.load %arg1[%c46] : memref<60xf32, #tpu.memory_space<smem>>
    %351 = vector.broadcast %350 : f32 to vector<8x128xf32>
    %352 = arith.mulf %351, %1 : vector<8x128xf32>
    %c47 = arith.constant 47 : index
    %353 = memref.load %arg1[%c47] : memref<60xf32, #tpu.memory_space<smem>>
    %354 = vector.broadcast %353 : f32 to vector<8x128xf32>
    %355 = arith.mulf %354, %3 : vector<8x128xf32>
    %356 = arith.addf %352, %355 : vector<8x128xf32>
    %c23_52 = arith.constant 23 : index
    %357 = memref.load %arg2[%c23_52] : memref<30xf32, #tpu.memory_space<smem>>
    %358 = vector.broadcast %357 : f32 to vector<8x128xf32>
    %359 = arith.addf %356, %358 : vector<8x128xf32>
    %c23_53 = arith.constant 23 : index
    %360 = memref.load %arg3[%c23_53] : memref<30xf32, #tpu.memory_space<smem>>
    %361 = math.tanh %359 : vector<8x128xf32>
    %362 = vector.broadcast %360 : f32 to vector<8x128xf32>
    %363 = arith.mulf %362, %361 : vector<8x128xf32>
    %364 = arith.addf %349, %363 : vector<8x128xf32>
    %c48 = arith.constant 48 : index
    %365 = memref.load %arg1[%c48] : memref<60xf32, #tpu.memory_space<smem>>
    %366 = vector.broadcast %365 : f32 to vector<8x128xf32>
    %367 = arith.mulf %366, %1 : vector<8x128xf32>
    %c49 = arith.constant 49 : index
    %368 = memref.load %arg1[%c49] : memref<60xf32, #tpu.memory_space<smem>>
    %369 = vector.broadcast %368 : f32 to vector<8x128xf32>
    %370 = arith.mulf %369, %3 : vector<8x128xf32>
    %371 = arith.addf %367, %370 : vector<8x128xf32>
    %c24_54 = arith.constant 24 : index
    %372 = memref.load %arg2[%c24_54] : memref<30xf32, #tpu.memory_space<smem>>
    %373 = vector.broadcast %372 : f32 to vector<8x128xf32>
    %374 = arith.addf %371, %373 : vector<8x128xf32>
    %c24_55 = arith.constant 24 : index
    %375 = memref.load %arg3[%c24_55] : memref<30xf32, #tpu.memory_space<smem>>
    %376 = math.tanh %374 : vector<8x128xf32>
    %377 = vector.broadcast %375 : f32 to vector<8x128xf32>
    %378 = arith.mulf %377, %376 : vector<8x128xf32>
    %379 = arith.addf %364, %378 : vector<8x128xf32>
    %c50 = arith.constant 50 : index
    %380 = memref.load %arg1[%c50] : memref<60xf32, #tpu.memory_space<smem>>
    %381 = vector.broadcast %380 : f32 to vector<8x128xf32>
    %382 = arith.mulf %381, %1 : vector<8x128xf32>
    %c51 = arith.constant 51 : index
    %383 = memref.load %arg1[%c51] : memref<60xf32, #tpu.memory_space<smem>>
    %384 = vector.broadcast %383 : f32 to vector<8x128xf32>
    %385 = arith.mulf %384, %3 : vector<8x128xf32>
    %386 = arith.addf %382, %385 : vector<8x128xf32>
    %c25_56 = arith.constant 25 : index
    %387 = memref.load %arg2[%c25_56] : memref<30xf32, #tpu.memory_space<smem>>
    %388 = vector.broadcast %387 : f32 to vector<8x128xf32>
    %389 = arith.addf %386, %388 : vector<8x128xf32>
    %c25_57 = arith.constant 25 : index
    %390 = memref.load %arg3[%c25_57] : memref<30xf32, #tpu.memory_space<smem>>
    %391 = math.tanh %389 : vector<8x128xf32>
    %392 = vector.broadcast %390 : f32 to vector<8x128xf32>
    %393 = arith.mulf %392, %391 : vector<8x128xf32>
    %394 = arith.addf %379, %393 : vector<8x128xf32>
    %c52 = arith.constant 52 : index
    %395 = memref.load %arg1[%c52] : memref<60xf32, #tpu.memory_space<smem>>
    %396 = vector.broadcast %395 : f32 to vector<8x128xf32>
    %397 = arith.mulf %396, %1 : vector<8x128xf32>
    %c53 = arith.constant 53 : index
    %398 = memref.load %arg1[%c53] : memref<60xf32, #tpu.memory_space<smem>>
    %399 = vector.broadcast %398 : f32 to vector<8x128xf32>
    %400 = arith.mulf %399, %3 : vector<8x128xf32>
    %401 = arith.addf %397, %400 : vector<8x128xf32>
    %c26_58 = arith.constant 26 : index
    %402 = memref.load %arg2[%c26_58] : memref<30xf32, #tpu.memory_space<smem>>
    %403 = vector.broadcast %402 : f32 to vector<8x128xf32>
    %404 = arith.addf %401, %403 : vector<8x128xf32>
    %c26_59 = arith.constant 26 : index
    %405 = memref.load %arg3[%c26_59] : memref<30xf32, #tpu.memory_space<smem>>
    %406 = math.tanh %404 : vector<8x128xf32>
    %407 = vector.broadcast %405 : f32 to vector<8x128xf32>
    %408 = arith.mulf %407, %406 : vector<8x128xf32>
    %409 = arith.addf %394, %408 : vector<8x128xf32>
    %c54 = arith.constant 54 : index
    %410 = memref.load %arg1[%c54] : memref<60xf32, #tpu.memory_space<smem>>
    %411 = vector.broadcast %410 : f32 to vector<8x128xf32>
    %412 = arith.mulf %411, %1 : vector<8x128xf32>
    %c55 = arith.constant 55 : index
    %413 = memref.load %arg1[%c55] : memref<60xf32, #tpu.memory_space<smem>>
    %414 = vector.broadcast %413 : f32 to vector<8x128xf32>
    %415 = arith.mulf %414, %3 : vector<8x128xf32>
    %416 = arith.addf %412, %415 : vector<8x128xf32>
    %c27_60 = arith.constant 27 : index
    %417 = memref.load %arg2[%c27_60] : memref<30xf32, #tpu.memory_space<smem>>
    %418 = vector.broadcast %417 : f32 to vector<8x128xf32>
    %419 = arith.addf %416, %418 : vector<8x128xf32>
    %c27_61 = arith.constant 27 : index
    %420 = memref.load %arg3[%c27_61] : memref<30xf32, #tpu.memory_space<smem>>
    %421 = math.tanh %419 : vector<8x128xf32>
    %422 = vector.broadcast %420 : f32 to vector<8x128xf32>
    %423 = arith.mulf %422, %421 : vector<8x128xf32>
    %424 = arith.addf %409, %423 : vector<8x128xf32>
    %c56 = arith.constant 56 : index
    %425 = memref.load %arg1[%c56] : memref<60xf32, #tpu.memory_space<smem>>
    %426 = vector.broadcast %425 : f32 to vector<8x128xf32>
    %427 = arith.mulf %426, %1 : vector<8x128xf32>
    %c57 = arith.constant 57 : index
    %428 = memref.load %arg1[%c57] : memref<60xf32, #tpu.memory_space<smem>>
    %429 = vector.broadcast %428 : f32 to vector<8x128xf32>
    %430 = arith.mulf %429, %3 : vector<8x128xf32>
    %431 = arith.addf %427, %430 : vector<8x128xf32>
    %c28_62 = arith.constant 28 : index
    %432 = memref.load %arg2[%c28_62] : memref<30xf32, #tpu.memory_space<smem>>
    %433 = vector.broadcast %432 : f32 to vector<8x128xf32>
    %434 = arith.addf %431, %433 : vector<8x128xf32>
    %c28_63 = arith.constant 28 : index
    %435 = memref.load %arg3[%c28_63] : memref<30xf32, #tpu.memory_space<smem>>
    %436 = math.tanh %434 : vector<8x128xf32>
    %437 = vector.broadcast %435 : f32 to vector<8x128xf32>
    %438 = arith.mulf %437, %436 : vector<8x128xf32>
    %439 = arith.addf %424, %438 : vector<8x128xf32>
    %c58 = arith.constant 58 : index
    %440 = memref.load %arg1[%c58] : memref<60xf32, #tpu.memory_space<smem>>
    %441 = vector.broadcast %440 : f32 to vector<8x128xf32>
    %442 = arith.mulf %441, %1 : vector<8x128xf32>
    %c59 = arith.constant 59 : index
    %443 = memref.load %arg1[%c59] : memref<60xf32, #tpu.memory_space<smem>>
    %444 = vector.broadcast %443 : f32 to vector<8x128xf32>
    %445 = arith.mulf %444, %3 : vector<8x128xf32>
    %446 = arith.addf %442, %445 : vector<8x128xf32>
    %c29_64 = arith.constant 29 : index
    %447 = memref.load %arg2[%c29_64] : memref<30xf32, #tpu.memory_space<smem>>
    %448 = vector.broadcast %447 : f32 to vector<8x128xf32>
    %449 = arith.addf %446, %448 : vector<8x128xf32>
    %c29_65 = arith.constant 29 : index
    %450 = memref.load %arg3[%c29_65] : memref<30xf32, #tpu.memory_space<smem>>
    %451 = math.tanh %449 : vector<8x128xf32>
    %452 = vector.broadcast %450 : f32 to vector<8x128xf32>
    %453 = arith.mulf %452, %451 : vector<8x128xf32>
    %454 = arith.addf %439, %453 : vector<8x128xf32>
    %c0_66 = arith.constant 0 : index
    %455 = memref.load %arg4[%c0_66] : memref<1xf32, #tpu.memory_space<smem>>
    %456 = vector.broadcast %455 : f32 to vector<8x128xf32>
    %457 = arith.addf %454, %456 : vector<8x128xf32>
    %c0_67 = arith.constant 0 : index
    %c0_68 = arith.constant 0 : index
    %458 = vector.load %arg6[%c0_67, %c0_68] : memref<8x128xf32, #tpu.memory_space<vmem>>, vector<8x128xf32>
    tpu.vector_store %arg6[%c0_67, %c0_68], %457 {strides = array<i32>} : memref<8x128xf32, #tpu.memory_space<vmem>>, vector<8x128xf32>,
    return
  }
  func.func @transform_0(%arg0: i32) -> i32 {
    %c0_i32 = arith.constant 0 : i32
    %c0_i32_0 = arith.constant 0 : i32
    return %c0_i32 : i32
  }
  func.func @transform_1(%arg0: i32) -> i32 {
    %c0_i32 = arith.constant 0 : i32
    %c0_i32_0 = arith.constant 0 : i32
    return %c0_i32 : i32
  }
  func.func @transform_2(%arg0: i32) -> i32 {
    %c0_i32 = arith.constant 0 : i32
    %c0_i32_0 = arith.constant 0 : i32
    return %c0_i32 : i32
  }
  func.func @transform_3(%arg0: i32) -> i32 {
    %c0_i32 = arith.constant 0 : i32
    %c0_i32_0 = arith.constant 0 : i32
    return %c0_i32 : i32
  }
  func.func @transform_4(%arg0: i32) -> (i32, i32, i32) {
    %c0_i32 = arith.constant 0 : i32
    %c0_i32_0 = arith.constant 0 : i32
    %c0_i32_1 = arith.constant 0 : i32
    return %c0_i32, %arg0, %c0_i32_0 : i32, i32, i32
  }
  func.func @transform_5(%arg0: i32) -> (i32, i32) {
    %c0_i32 = arith.constant 0 : i32
    %c0_i32_0 = arith.constant 0 : i32
    return %arg0, %c0_i32 : i32, i32
  }
}

</mosaic_0001>

<bundles_post_ra>
// kernel: forward.1
= control target key start
LH: loop header
LB: loop body
LE: loop exit
PB: predicated region body
PF: predicated region fallthrough
CT: control target
= control target key end

     0   :  { %11 = vsyncpa [#allocation4], 0  ;;  %s1189_s0 = inlined_call_operand.vmem [shape: f32[60], index: 0, kind: input, shape index: {}]   ;;  %s1190_s1 = inlined_call_operand.vmem [shape: f32[30], index: 1, kind: input, shape index: {}]   ;;  %s1191_s2 = inlined_call_operand.vmem [shape: f32[30], index: 2, kind: input, shape index: {}]   ;;  %s1192_s3 = inlined_call_operand.<no memory space> [shape: f32[1], index: 3, kind: input, shape index: {}]   ;;  %s1193_s4 = inlined_call_operand.vmem [shape: f32[2,8,128], index: 4, kind: input, shape index: {}]   ;;  %s1194_s5 = inlined_call_operand.vmem [shape: f32[8,128], index: 5, kind: output, shape index: {}]  }
   0x1   :  { %12 = vsyncpa [#allocation6], 0  ;;  %s29_s20 = sshll.u32 %s1190_s1, 4  ;;  %s19_s23 = sshll.u32 %s1189_s0, 4  ;;  %s30_s20 = int_to_ptr.vmem [resolvable:$true] %s29_s20  ;;  %s20_s23 = int_to_ptr.vmem [resolvable:$true] %s19_s23 }
   0x2   :  { %s701_s24 = scalar_lea.vmem %s30_s20, 16  ;;  %p706_p1 = scmp.lt.s32.totalorder %s30_s20, %s30_s20 }
   0x3   :  { %p702_p0 = scmp.ne.s32.totalorder %s30_s20, %s701_s24  ;;  %p707_p2 = scmp.lt.s32.totalorder %s701_s24, %s701_s24 }
   0x5   :  { %p708_p3 = por %p707_p2, %p706_p1 }
   0x7   :  { %p709_p4 = pnand %p708_p3, %p702_p0 }
   0x9   :  { %712 = shalt.err (!%p709_p4)
}
   0xa   :  { %s741_s25 = smov [#allocation5]   ;;  %s713_s26 = scalar_lea.vmem %s20_s23, 16 }
   0xb   :  { %32 = dma.vmem_to_smem %s30_s20, 16, %s741_s25, [#allocation6]  }
   0xc   :  { %p714_p5 = scmp.ne.s32.totalorder %s20_s23, %s713_s26  ;;  %p718_p6 = scmp.lt.s32.totalorder %s20_s23, %s20_s23 }
   0xd   :  { %p719_p7 = scmp.lt.s32.totalorder %s713_s26, %s713_s26 }
   0xf   :  { %p720_p8 = por %p719_p7, %p718_p6 }
  0x11   :  { %p721_p9 = pnand %p720_p8, %p714_p5 }
  0x13   :  { %724 = shalt.err (!%p721_p9)
}
  0x14   :  { %s742_s1 = smov [#allocation3]   ;;  %s39_s28 = sshll.u32 %s1191_s2, 4  ;;  %s40_s28 = int_to_ptr.vmem [resolvable:$true] %s39_s28 }
  0x15   :  { %22 = dma.vmem_to_smem %s20_s23, 16, %s742_s1, [#allocation4]  }
  0x16   :  { %s725_s29 = scalar_lea.vmem %s40_s28, 16  ;;  %p730_p11 = scmp.lt.s32.totalorder %s40_s28, %s40_s28 }
  0x17   :  { %p726_p10 = scmp.ne.s32.totalorder %s40_s28, %s725_s29  ;;  %p731_p12 = scmp.lt.s32.totalorder %s725_s29, %s725_s29 }
  0x19   :  { %p732_p13 = por %p731_p12, %p730_p11 }
  0x1b   :  { %p733_p0 = pnand %p732_p13, %p726_p10 }
  0x1d   :  { %736 = shalt.err (!%p733_p0)
}
  0x1e   :  { %s743_s30 = smov [#allocation7]  }
  0x1f   :  { %42 = dma.vmem_to_smem %s40_s28, 16, %s743_s30, [#allocation6]  }
  0x20   :  { %737 = dma.done.wait [#allocation4], 16  }
  0x21   :  { %738 = vsyncadd [#allocation4], 4294967280 }
  0x22   :  { %739 = dma.done.wait [#allocation6], 32  }
  0x23   :  { %740 = vsyncadd [#allocation6], 4294967264 }
  0x24   :  { %56 = sfence }
  0x25   :  { %s60_s6 = sld [smem:[#allocation3]]  ;;  %s521_s7 = sld [smem:[#allocation3 + $0x1]]  ;;  %v790_v0 = vld [vmem:[%s1193_s4] sm:$0xff]  ;;  %v795_v1 = vld [vmem:[%s1193_s4 + $0x8] sm:$0xff] }
  0x26   :  { %s783_s8 = sld [smem:[#allocation5]]  ;;  %s522_s2 = sld [smem:[#allocation3 + $0x2]] }
  0x27   :  { %s523_s9 = sld [smem:[#allocation3 + $0x3]]  ;;  %s785_s10 = sld [smem:[#allocation5 + $0x1]] }
  0x28   :  { %s526_s15 = sld [smem:[#allocation3 + $0x4]]  ;;  %s527_s16 = sld [smem:[#allocation3 + $0x5]] }
  0x29   :  { %s797_s17 = sld [smem:[#allocation7]]  ;;  %s799_s18 = sld [smem:[#allocation5 + $0x2]] }
  0x2a   :  { %s801_s19 = sld [smem:[#allocation3 + $0x6]]  ;;  %s803_s20 = sld [smem:[#allocation3 + $0x7]] }
  0x2b   :  { %v61_v2 = vstv %s60_s6  ;;  %v64_v3 = vstv %s521_s7  ;;  %s807_s21 = sld [smem:[#allocation7 + $0x1]]  ;;  %s809_s4 = sld [smem:[#allocation5 + $0x3]] }
  0x2c   :  { %v62_v4 = vmul.f32 %v61_v2, %v790_v0  ;;  %v65_v5 = vmul.f32 %v795_v1, %v64_v3  ;;  %v68_v6 = vstv %s783_s8  ;;  %v76_v7 = vstv %s522_s2  ;;  %s812_s22 = sld [smem:[#allocation3 + $0x8]]  ;;  %s814_s23 = sld [smem:[#allocation3 + $0x9]] }
  0x2d   :  { %v79_v8 = vstv %s523_s9  ;;  %v77_v10 = vmul.f32 %v76_v7, %v790_v0  ;;  %s818_s24 = sld [smem:[#allocation5 + $0x4]]  ;;  %v83_v12 = vstv %s785_s10  ;;  %s821_s25 = sld [smem:[#allocation3 + $0xa]] }
  0x2e   :  { %v66_v9 = vadd.f32 %v65_v5, %v62_v4  ;;  %v80_v11 = vmul.f32 %v795_v1, %v79_v8  ;;  %v91_v13 = vstv %s526_s15  ;;  %v94_v14 = vstv %s527_s16  ;;  %s823_s26 = sld [smem:[#allocation3 + $0xb]]  ;;  %s827_s1 = sld [smem:[#allocation7 + $0x2]] }
  0x2f   :  { %v92_v17 = vmul.f32 %v91_v13, %v790_v0  ;;  %v95_v18 = vmul.f32 %v795_v1, %v94_v14  ;;  %s829_s0 = sld [smem:[#allocation5 + $0x5]]  ;;  %v98_v19 = vstv %s799_s18  ;;  %s834_s27 = sld [smem:[#allocation3 + $0xc]]  ;;  %v72_v31 = vstv %s797_s17 }
  0x30   :  { %v69_v15 = vadd.f32 %v68_v6, %v66_v9  ;;  %v81_v16 = vadd.f32 %v80_v11, %v77_v10  ;;  %v106_v20 = vstv %s801_s19  ;;  %v109_v21 = vstv %s803_s20  ;;  %s836_s28 = sld [smem:[#allocation3 + $0xd]]  ;;  %s839_s29 = sld [smem:[#allocation5 + $0x6]] }
  0x31   :  { %v96_v23 = vadd.f32 %v95_v18, %v92_v17  ;;  %v107_v24 = vmul.f32 %v106_v20, %v790_v0  ;;  %v110_v25 = vmul.f32 %v795_v1, %v109_v21  ;;  %v113_v26 = vstv %s809_s4  ;;  %s844_s30 = sld [smem:[#allocation3 + $0xe]]  ;;  %s846_s6 = sld [smem:[#allocation3 + $0xf]] }
  0x32   :  { %641 = vtanh.f32 %v69_v15  ;;  %v84_v22 = vadd.f32 %v83_v12, %v81_v16  ;;  %v121_v27 = vstv %s812_s22  ;;  %s848_s7 = sld [smem:[#allocation7 + $0x3]]  ;;  %v124_v30 = vstv %s814_s23  ;;  %s852_s8 = sld [smem:[#allocation5 + $0x7]] }
  0x33   :  { %v99_v28 = vadd.f32 %v98_v19, %v96_v23  ;;  %v122_v29 = vmul.f32 %v121_v27, %v790_v0  ;;  %v87_v32 = vstv %s807_s21  ;;  %v111_v33 = vadd.f32 %v110_v25, %v107_v24  ;;  %s857_s2 = sld [smem:[#allocation7 + $0x4]]  ;;  %s859_s9 = sld [smem:[#allocation3 + $0x10]] }
  0x34   :  { %643 = vtanh.f32 %v84_v22  ;;  %v125_v34 = vmul.f32 %v795_v1, %v124_v30  ;;  %v128_v35 = vstv %s818_s24  ;;  %v136_v36 = vstv %s821_s25  ;;  %s864_s10 = sld [smem:[#allocation7 + $0x5]]  ;;  %s866_s11 = sld [smem:[#allocation3 + $0x11]] }
  0x35   :  { %645 = vtanh.f32 %v99_v28  ;;  %v139_v37 = vstv %s823_s26  ;;  %v114_v38 = vadd.f32 %v113_v26, %v111_v33  ;;  %v137_v40 = vmul.f32 %v136_v36, %v790_v0  ;;  %s870_s12 = sld [smem:[#allocation3 + $0x12]]  ;;  %s876_s13 = sld [smem:[#allocation5 + $0x8]] }
  0x36   :  { %v126_v39 = vadd.f32 %v125_v34, %v122_v29  ;;  %v140_v41 = vmul.f32 %v795_v1, %v139_v37  ;;  %v102_v42 = vstv %s827_s1  ;;  %v143_v43 = vstv %s829_s0  ;;  %s878_s14 = sld [smem:[#allocation3 + $0x13]]  ;;  %s881_s15 = sld [smem:[#allocation5 + $0x9]] }
  0x37   :  { %v151_v44 = vstv %s834_s27  ;;  %v154_v45 = vstv %s836_s28  ;;  %647 = vtanh.f32 %v114_v38  ;;  %v158_v50 = vstv %s839_s29  ;;  %s887_s16 = sld [smem:[#allocation3 + $0x14]]  ;;  %s889_s17 = sld [smem:[#allocation3 + $0x15]] }
  0x38   :  { %v129_v46 = vadd.f32 %v128_v35, %v126_v39  ;;  %v141_v47 = vadd.f32 %v140_v41, %v137_v40  ;;  %v152_v48 = vmul.f32 %v151_v44, %v790_v0  ;;  %v155_v49 = vmul.f32 %v795_v1, %v154_v45  ;;  %s894_s18 = sld [smem:[#allocation7 + $0x6]]  ;;  %s898_s19 = sld [smem:[#allocation5 + $0xa]] }
  0x39   :  { %v166_v51 = vstv %s844_s30  ;;  %v169_v52 = vstv %s846_s6  ;;  %v117_v57 = vstv %s848_s7  ;;  %v173_v59 = vstv %s852_s8  ;;  %s901_s20 = sld [smem:[#allocation3 + $0x16]]  ;;  %s903_s21 = sld [smem:[#allocation3 + $0x17]] }
  0x3a   :  { %649 = vtanh.f32 %v129_v46  ;;  %v144_v53 = vadd.f32 %v143_v43, %v141_v47  ;;  %v167_v54 = vmul.f32 %v166_v51, %v790_v0  ;;  %v170_v55 = vmul.f32 %v795_v1, %v169_v52  ;;  %s908_s4 = sld [smem:[#allocation7 + $0x7]]  ;;  %s912_s22 = sld [smem:[#allocation5 + $0xb]] }
  0x3b   :  { %v156_v58 = vadd.f32 %v155_v49, %v152_v48  ;;  %v181_v60 = vstv %s859_s9  ;;  %v132_v3 = vstv %s857_s2  ;;  %v147_v4 = vstv %s864_s10  ;;  %s917_s23 = sld [smem:[#allocation3 + $0x18]]  ;;  %s919_s24 = sld [smem:[#allocation3 + $0x19]] }
  0x3c   :  { %v642_v56 = vpop.eup %641  ;;  %651 = vtanh.f32 %v144_v53  ;;  %v171_v62 = vadd.f32 %v170_v55, %v167_v54  ;;  %v182_v63 = vmul.f32 %v181_v60, %v790_v0  ;;  %v184_v6 = vstv %s866_s11  ;;  %s921_s25 = sld [smem:[#allocation7 + $0x8]]  ;;  %s927_s26 = sld [smem:[#allocation5 + $0xc]] }
  0x3d   :  { %v73_v61 = vmul.f32 %v642_v56, %v72_v31  ;;  %v159_v5 = vadd.f32 %v158_v50, %v156_v58  ;;  %v185_v9 = vmul.f32 %v795_v1, %v184_v6  ;;  %v196_v10 = vstv %s870_s12  ;;  %s931_s1 = sld [smem:[#allocation3 + $0x1a]]  ;;  %s933_s0 = sld [smem:[#allocation3 + $0x1b]] }
  0x3e   :  { %v644_v2 = vpop.eup %643  ;;  %v174_v8 = vadd.f32 %v173_v59, %v171_v62  ;;  %v188_v12 = vstv %s876_s13  ;;  %v197_v13 = vmul.f32 %v196_v10, %v790_v0  ;;  %v199_v14 = vstv %s878_s14  ;;  %s937_s27 = sld [smem:[#allocation7 + $0x9]]  ;;  %s941_s28 = sld [smem:[#allocation5 + $0xd]] }
  0x3f   :  { %v88_v7 = vmul.f32 %v644_v2, %v87_v32  ;;  %v646_v11 = vpop.eup %645  ;;  %653 = vtanh.f32 %v159_v5  ;;  %v186_v17 = vadd.f32 %v185_v9, %v182_v63  ;;  %v200_v18 = vmul.f32 %v795_v1, %v199_v14  ;;  %s944_s29 = sld [smem:[#allocation3 + $0x1c]]  ;;  %s946_s30 = sld [smem:[#allocation3 + $0x1d]] }
  0x40   :  { %v103_v16 = vmul.f32 %v646_v11, %v102_v42  ;;  %655 = vtanh.f32 %v174_v8  ;;  %v203_v19 = vstv %s881_s15  ;;  %v211_v20 = vstv %s887_s16  ;;  %s949_s6 = sld [smem:[#allocation7 + $0xa]]  ;;  %s953_s7 = sld [smem:[#allocation7 + $0xb]] }
  0x41   :  { %v89_v15 = vadd.f32 %v88_v7, %v73_v61  ;;  %v214_v21 = vstv %s889_s17  ;;  %v648_v22 = vpop.eup %647  ;;  %v189_v24 = vadd.f32 %v188_v12, %v186_v17  ;;  %v212_v25 = vmul.f32 %v211_v20, %v790_v0  ;;  %s956_s8 = sld [smem:[#allocation5 + $0xe]]  ;;  %s962_s9 = sld [smem:[#allocation3 + $0x1f]] }
  0x42   :  { %v215_v26 = vmul.f32 %v795_v1, %v214_v21  ;;  %v118_v27 = vmul.f32 %v648_v22, %v117_v57  ;;  %v162_v28 = vstv %s894_s18  ;;  %v201_v29 = vadd.f32 %v200_v18, %v197_v13  ;;  %s960_s2 = sld [smem:[#allocation3 + $0x1e]]  ;;  %s969_s10 = sld [smem:[#allocation5 + $0xf]] }
  0x43   :  { %v104_v23 = vadd.f32 %v103_v16, %v89_v15  ;;  %v218_v30 = vstv %s898_s19  ;;  %657 = vtanh.f32 %v189_v24  ;;  %v226_v33 = vstv %s901_s20  ;;  %s971_s11 = sld [smem:[#allocation3 + $0x20]]  ;;  %s975_s12 = sld [smem:[#allocation3 + $0x21]] }
  0x44   :  { %v650_v31 = vpop.eup %649  ;;  %v216_v32 = vadd.f32 %v215_v26, %v212_v25  ;;  %v229_v34 = vstv %s903_s21  ;;  %v204_v37 = vadd.f32 %v203_v19, %v201_v29  ;;  %v227_v38 = vmul.f32 %v226_v33, %v790_v0  ;;  %s978_s13 = sld [smem:[#allocation7 + $0xc]]  ;;  %s981_s14 = sld [smem:[#allocation5 + $0x10]] }
  0x45   :  { %v119_v35 = vadd.f32 %v118_v27, %v104_v23  ;;  %v133_v36 = vmul.f32 %v650_v31, %v132_v3  ;;  %v177_v40 = vstv %s908_s4  ;;  %v230_v42 = vmul.f32 %v795_v1, %v229_v34  ;;  %s985_s15 = sld [smem:[#allocation3 + $0x22]]  ;;  %s987_s16 = sld [smem:[#allocation3 + $0x23]] }
  0x46   :  { %v652_v39 = vpop.eup %651  ;;  %v219_v41 = vadd.f32 %v218_v30, %v216_v32  ;;  %v233_v43 = vstv %s912_s22  ;;  %659 = vtanh.f32 %v204_v37  ;;  %v241_v46 = vstv %s917_s23  ;;  %s992_s17 = sld [smem:[#allocation7 + $0xd]]  ;;  %s995_s18 = sld [smem:[#allocation5 + $0x11]] }
  0x47   :  { %v134_v44 = vadd.f32 %v133_v36, %v119_v35  ;;  %v148_v45 = vmul.f32 %v652_v39, %v147_v4  ;;  %v231_v47 = vadd.f32 %v230_v42, %v227_v38  ;;  %v242_v48 = vmul.f32 %v241_v46, %v790_v0  ;;  %s1000_s19 = sld [smem:[#allocation3 + $0x24]]  ;;  %s1002_s20 = sld [smem:[#allocation3 + $0x25]] }
  0x48   :  { %661 = vtanh.f32 %v219_v41  ;;  %v244_v49 = vstv %s919_s24  ;;  %v192_v52 = vstv %s921_s25  ;;  %v248_v54 = vstv %s927_s26  ;;  %s1004_s21 = sld [smem:[#allocation7 + $0xe]]  ;;  %s1009_s4 = sld [smem:[#allocation7 + $0xf]] }
  0x49   :  { %v654_v50 = vpop.eup %653  ;;  %v149_v51 = vadd.f32 %v148_v45, %v134_v44  ;;  %v245_v53 = vmul.f32 %v795_v1, %v244_v49  ;;  %v234_v57 = vadd.f32 %v233_v43, %v231_v47  ;;  %v256_v58 = vstv %s931_s1  ;;  %s1012_s22 = sld [smem:[#allocation5 + $0x12]]  ;;  %s1016_s23 = sld [smem:[#allocation3 + $0x26]] }
  0x4a   :  { %v656_v55 = vpop.eup %655  ;;  %v163_v56 = vmul.f32 %v654_v50, %v162_v28  ;;  %v259_v59 = vstv %s933_s0  ;;  %v257_v62 = vmul.f32 %v256_v58, %v790_v0  ;;  %v207_v3 = vstv %s937_s27  ;;  %s1018_s24 = sld [smem:[#allocation3 + $0x27]]  ;;  %s1023_s25 = sld [smem:[#allocation7 + $0x10]] }
  0x4b   :  { %v178_v60 = vmul.f32 %v656_v55, %v177_v40  ;;  %v246_v61 = vadd.f32 %v245_v53, %v242_v48  ;;  %v260_v63 = vmul.f32 %v795_v1, %v259_v59  ;;  %663 = vtanh.f32 %v234_v57  ;;  %s1027_s26 = sld [smem:[#allocation3 + $0x28]]  ;;  %s1031_s1 = sld [smem:[#allocation5 + $0x13]] }
  0x4c   :  { %v164_v2 = vadd.f32 %v163_v56, %v149_v51  ;;  %v263_v4 = vstv %s941_s28  ;;  %v271_v7 = vstv %s944_s29  ;;  %v274_v8 = vstv %s946_s30  ;;  %s1033_s0 = sld [smem:[#allocation3 + $0x29]]  ;;  %s1039_s28 = sld [smem:[#allocation5 + $0x14]] }
  0x4d   :  { %v249_v5 = vadd.f32 %v248_v54, %v246_v61  ;;  %v261_v6 = vadd.f32 %v260_v63, %v257_v62  ;;  %v658_v9 = vpop.eup %657  ;;  %v222_v11 = vstv %s949_s6  ;;  %v272_v12 = vmul.f32 %v271_v7, %v790_v0  ;;  %s1037_s27 = sld [smem:[#allocation7 + $0x11]]  ;;  %s1043_s29 = sld [smem:[#allocation3 + $0x2a]] }
  0x4e   :  { %v179_v10 = vadd.f32 %v178_v60, %v164_v2  ;;  %v275_v13 = vmul.f32 %v795_v1, %v274_v8  ;;  %v193_v14 = vmul.f32 %v658_v9, %v192_v52  ;;  %v278_v16 = vstv %s956_s8  ;;  %s1045_s30 = sld [smem:[#allocation3 + $0x2b]]  ;;  %s1051_s6 = sld [smem:[#allocation5 + $0x15]] }
  0x4f   :  { %665 = vtanh.f32 %v249_v5  ;;  %v264_v15 = vadd.f32 %v263_v4, %v261_v6  ;;  %v237_v17 = vstv %s953_s7  ;;  %v286_v19 = vstv %s960_s2  ;;  %s1053_s7 = sld [smem:[#allocation3 + $0x2c]]  ;;  %s1058_s8 = sld [smem:[#allocation3 + $0x2d]] }
  0x50   :  { %v276_v18 = vadd.f32 %v275_v13, %v272_v12  ;;  %v289_v20 = vstv %s962_s9  ;;  %v660_v21 = vpop.eup %659  ;;  %v194_v22 = vadd.f32 %v193_v14, %v179_v10  ;;  %v287_v23 = vmul.f32 %v286_v19, %v790_v0  ;;  %s1060_s2 = sld [smem:[#allocation7 + $0x12]]  ;;  %s1066_s9 = sld [smem:[#allocation5 + $0x16]] }
  0x51   :  { %667 = vtanh.f32 %v264_v15  ;;  %v290_v24 = vmul.f32 %v795_v1, %v289_v20  ;;  %v208_v26 = vmul.f32 %v660_v21, %v207_v3  ;;  %v293_v28 = vstv %s969_s10  ;;  %s1068_s10 = sld [smem:[#allocation3 + $0x2e]] }
  0x52   :  { %v662_v25 = vpop.eup %661  ;;  %v279_v27 = vadd.f32 %v278_v16, %v276_v18  ;;  %v301_v29 = vstv %s971_s11  ;;  %v304_v33 = vstv %s975_s12  ;;  %v252_v35 = vstv %s978_s13  ;;  %s1073_s11 = sld [smem:[#allocation3 + $0x2f]]  ;;  %s1075_s12 = sld [smem:[#allocation7 + $0x13]] }
  0x53   :  { %v223_v30 = vmul.f32 %v662_v25, %v222_v11  ;;  %v291_v31 = vadd.f32 %v290_v24, %v287_v23  ;;  %v302_v32 = vmul.f32 %v301_v29, %v790_v0  ;;  %v209_v34 = vadd.f32 %v208_v26, %v194_v22  ;;  %s1082_s13 = sld [smem:[#allocation5 + $0x17]] }
  0x54   :  { %669 = vtanh.f32 %v279_v27  ;;  %v305_v36 = vmul.f32 %v795_v1, %v304_v33  ;;  %v308_v38 = vstv %s981_s14  ;;  %v316_v39 = vstv %s985_s15  ;;  %s1084_s14 = sld [smem:[#allocation3 + $0x30]]  ;;  %s1087_s15 = sld [smem:[#allocation3 + $0x31]] }
  0x55   :  { %v294_v37 = vadd.f32 %v293_v28, %v291_v31  ;;  %v319_v40 = vstv %s987_s16  ;;  %v664_v41 = vpop.eup %663  ;;  %v224_v42 = vadd.f32 %v223_v30, %v209_v34  ;;  %v317_v44 = vmul.f32 %v316_v39, %v790_v0  ;;  %s1089_s16 = sld [smem:[#allocation7 + $0x14]] }
  0x56   :  { %v306_v43 = vadd.f32 %v305_v36, %v302_v32  ;;  %v320_v45 = vmul.f32 %v795_v1, %v319_v40  ;;  %v238_v46 = vmul.f32 %v664_v41, %v237_v17  ;;  %v267_v47 = vstv %s992_s17  ;;  %s1094_s17 = sld [smem:[#allocation5 + $0x18]] }
  0x57   :  { %671 = vtanh.f32 %v294_v37  ;;  %v323_v48 = vstv %s995_s18  ;;  %v331_v51 = vstv %s1000_s19  ;;  %v334_v52 = vstv %s1002_s20  ;;  %s1098_s18 = sld [smem:[#allocation3 + $0x32]]  ;;  %s1100_s19 = sld [smem:[#allocation3 + $0x33]] }
  0x58   :  { %v309_v49 = vadd.f32 %v308_v38, %v306_v43  ;;  %v321_v50 = vadd.f32 %v320_v45, %v317_v44  ;;  %v239_v54 = vadd.f32 %v238_v46, %v224_v42  ;;  %v282_v55 = vstv %s1004_s21  ;;  %s1103_s20 = sld [smem:[#allocation7 + $0x15]]  ;;  %s1108_s21 = sld [smem:[#allocation5 + $0x19]] }
  0x59   :  { %v666_v53 = vpop.eup %665  ;;  %v332_v56 = vmul.f32 %v331_v51, %v790_v0  ;;  %v335_v57 = vmul.f32 %v795_v1, %v334_v52  ;;  %v338_v60 = vstv %s1012_s22  ;;  %v297_v62 = vstv %s1009_s4  ;;  %s1110_s4 = sld [smem:[#allocation3 + $0x34]]  ;;  %s1112_s22 = sld [smem:[#allocation7 + $0x16]] }
  0x5a   :  { %v253_v58 = vmul.f32 %v666_v53, %v252_v35  ;;  %673 = vtanh.f32 %v309_v49  ;;  %v324_v59 = vadd.f32 %v323_v48, %v321_v50  ;;  %v346_v2 = vstv %s1016_s23  ;;  %s1116_s23 = sld [smem:[#allocation7 + $0x17]] }
  0x5b   :  { %v668_v61 = vpop.eup %667  ;;  %v336_v63 = vadd.f32 %v335_v57, %v332_v56  ;;  %v349_v3 = vstv %s1018_s24  ;;  %v347_v6 = vmul.f32 %v346_v2, %v790_v0  ;;  %v312_v7 = vstv %s1023_s25  ;;  %s1120_s24 = sld [smem:[#allocation3 + $0x35]]  ;;  %s1122_s25 = sld [smem:[#allocation3 + $0x36]] }
  0x5c   :  { %v254_v4 = vadd.f32 %v253_v58, %v239_v54  ;;  %v268_v5 = vmul.f32 %v668_v61, %v267_v47  ;;  %675 = vtanh.f32 %v324_v59  ;;  %v350_v9 = vmul.f32 %v795_v1, %v349_v3 }
  0x5d   :  { %v339_v8 = vadd.f32 %v338_v60, %v336_v63  ;;  %v361_v10 = vstv %s1027_s26  ;;  %v353_v13 = vstv %s1031_s1  ;;  %v364_v15 = vstv %s1033_s0  ;;  %s1128_s26 = sld [smem:[#allocation5 + $0x1a]]  ;;  %s1130_s1 = sld [smem:[#allocation3 + $0x37]] }
  0x5e   :  { %v670_v11 = vpop.eup %669  ;;  %v269_v12 = vadd.f32 %v268_v5, %v254_v4  ;;  %v362_v14 = vmul.f32 %v361_v10, %v790_v0  ;;  %v351_v17 = vadd.f32 %v350_v9, %v347_v6  ;;  %v365_v18 = vmul.f32 %v795_v1, %v364_v15  ;;  %s1134_s0 = sld [smem:[#allocation5 + $0x1b]] }
  0x5f   :  { %v283_v16 = vmul.f32 %v670_v11, %v282_v55  ;;  %677 = vtanh.f32 %v339_v8  ;;  %v327_v19 = vstv %s1037_s27  ;;  %v368_v20 = vstv %s1039_s28  ;;  %s1139_s27 = sld [smem:[#allocation3 + $0x38]]  ;;  %s1141_s28 = sld [smem:[#allocation3 + $0x39]] }
  0x60   :  { %v376_v21 = vstv %s1043_s29  ;;  %v379_v22 = vstv %s1045_s30  ;;  %v354_v25 = vadd.f32 %v353_v13, %v351_v17  ;;  %v366_v26 = vadd.f32 %v365_v18, %v362_v14  ;;  %s1143_s29 = sld [smem:[#allocation7 + $0x18]]  ;;  %s1150_s30 = sld [smem:[#allocation5 + $0x1c]] }
  0x61   :  { %v672_v23 = vpop.eup %671  ;;  %v284_v24 = vadd.f32 %v283_v16, %v269_v12  ;;  %v377_v27 = vmul.f32 %v376_v21, %v790_v0  ;;  %v380_v29 = vmul.f32 %v795_v1, %v379_v22  ;;  %v383_v30 = vstv %s1051_s6  ;;  %s1153_s6 = sld [smem:[#allocation3 + $0x3a]] }
  0x62   :  { %v298_v28 = vmul.f32 %v672_v23, %v297_v62  ;;  %v391_v31 = vstv %s1053_s7  ;;  %679 = vtanh.f32 %v354_v25  ;;  %v369_v32 = vadd.f32 %v368_v20, %v366_v26  ;;  %s1155_s7 = sld [smem:[#allocation3 + $0x3b]] }
  0x63   :  { %v392_v33 = vmul.f32 %v391_v31, %v790_v0  ;;  %v394_v34 = vstv %s1058_s8  ;;  %v342_v37 = vstv %s1060_s2  ;;  %v381_v38 = vadd.f32 %v380_v29, %v377_v27  ;;  %s1161_s8 = sld [smem:[#allocation5 + $0x1d]]  ;;  %s1167_s2 = sld [smem:[#allocation7 + $0x19]] }
  0x64   :  { %v674_v35 = vpop.eup %673  ;;  %v299_v36 = vadd.f32 %v298_v28, %v284_v24  ;;  %v395_v39 = vmul.f32 %v795_v1, %v394_v34  ;;  %681 = vtanh.f32 %v369_v32  ;;  %v398_v41 = vstv %s1066_s9  ;;  %s625_s9 = sld [smem:[#allocation7 + $0x1a]] }
  0x65   :  { %v313_v40 = vmul.f32 %v674_v35, %v312_v7  ;;  %v406_v42 = vstv %s1068_s10  ;;  %v384_v44 = vadd.f32 %v383_v30, %v381_v38  ;;  %v409_v47 = vstv %s1073_s11  ;;  %s629_s10 = sld [smem:[#allocation7 + $0x1b]]  ;;  %s633_s11 = sld [smem:[#allocation7 + $0x1c]] }
  0x66   :  { %v676_v43 = vpop.eup %675  ;;  %v396_v45 = vadd.f32 %v395_v39, %v392_v33  ;;  %v407_v46 = vmul.f32 %v406_v42, %v790_v0  ;;  %v357_v50 = vstv %s1075_s12  ;;  %v410_v51 = vmul.f32 %v795_v1, %v409_v47  ;;  %s637_s12 = sld [smem:[#allocation7 + $0x1d]] }
  0x67   :  { %v314_v48 = vadd.f32 %v313_v40, %v299_v36  ;;  %v328_v49 = vmul.f32 %v676_v43, %v327_v19  ;;  %683 = vtanh.f32 %v384_v44  ;;  %v413_v53 = vstv %s1082_s13 }
  0x68   :  { %v399_v52 = vadd.f32 %v398_v41, %v396_v45  ;;  %v421_v54 = vstv %s1084_s14  ;;  %v411_v57 = vadd.f32 %v410_v51, %v407_v46  ;;  %v424_v59 = vstv %s1087_s15 }
  0x69   :  { %v678_v55 = vpop.eup %677  ;;  %v329_v56 = vadd.f32 %v328_v49, %v314_v48  ;;  %v422_v58 = vmul.f32 %v421_v54, %v790_v0  ;;  %v372_v61 = vstv %s1089_s16  ;;  %v425_v62 = vmul.f32 %v795_v1, %v424_v59 }
  0x6a   :  { %v343_v60 = vmul.f32 %v678_v55, %v342_v37  ;;  %685 = vtanh.f32 %v399_v52  ;;  %v414_v63 = vadd.f32 %v413_v53, %v411_v57  ;;  %v428_v2 = vstv %s1094_s17 }
  0x6b   :  { %v436_v3 = vstv %s1098_s18  ;;  %v439_v4 = vstv %s1100_s19  ;;  %v426_v6 = vadd.f32 %v425_v62, %v422_v58  ;;  %v387_v10 = vstv %s1103_s20 }
  0x6c   :  { %v344_v5 = vadd.f32 %v343_v60, %v329_v56  ;;  %v437_v7 = vmul.f32 %v436_v3, %v790_v0  ;;  %v440_v8 = vmul.f32 %v795_v1, %v439_v4  ;;  %v680_v9 = vpop.eup %679  ;;  %687 = vtanh.f32 %v414_v63 }
  0x6d   :  { %v443_v11 = vstv %s1108_s21  ;;  %v451_v12 = vstv %s1110_s4  ;;  %v358_v13 = vmul.f32 %v680_v9, %v357_v50  ;;  %v402_v14 = vstv %s1112_s22 }
  0x6e   :  { %v429_v15 = vadd.f32 %v428_v2, %v426_v6  ;;  %v441_v16 = vadd.f32 %v440_v8, %v437_v7  ;;  %v682_v17 = vpop.eup %681  ;;  %v417_v18 = vstv %s1116_s23  ;;  %v452_v19 = vmul.f32 %v451_v12, %v790_v0 }
  0x6f   :  { %v454_v20 = vstv %s1120_s24  ;;  %v466_v21 = vstv %s1122_s25  ;;  %v359_v22 = vadd.f32 %v358_v13, %v344_v5  ;;  %v373_v23 = vmul.f32 %v682_v17, %v372_v61 }
  0x70   :  { %689 = vtanh.f32 %v429_v15  ;;  %v444_v24 = vadd.f32 %v443_v11, %v441_v16  ;;  %v455_v25 = vmul.f32 %v795_v1, %v454_v20  ;;  %v458_v26 = vstv %s1128_s26 }
  0x71   :  { %v467_v27 = vmul.f32 %v466_v21, %v790_v0  ;;  %v469_v28 = vstv %s1130_s1  ;;  %v684_v29 = vpop.eup %683  ;;  %v374_v30 = vadd.f32 %v373_v23, %v359_v22  ;;  %v473_v32 = vstv %s1134_s0 }
  0x72   :  { %691 = vtanh.f32 %v444_v24  ;;  %v470_v31 = vmul.f32 %v795_v1, %v469_v28  ;;  %v388_v33 = vmul.f32 %v684_v29, %v387_v10  ;;  %v456_v34 = vadd.f32 %v455_v25, %v452_v19 }
  0x73   :  { %v481_v35 = vstv %s1139_s27  ;;  %v484_v36 = vstv %s1141_s28  ;;  %v432_v38 = vstv %s1143_s29  ;;  %v488_v45 = vstv %s1150_s30 }
  0x74   :  { %v686_v37 = vpop.eup %685  ;;  %v471_v39 = vadd.f32 %v470_v31, %v467_v27  ;;  %v482_v40 = vmul.f32 %v481_v35, %v790_v0  ;;  %v485_v41 = vmul.f32 %v795_v1, %v484_v36  ;;  %v389_v42 = vadd.f32 %v388_v33, %v374_v30 }
  0x75   :  { %v403_v43 = vmul.f32 %v686_v37, %v402_v14  ;;  %v459_v44 = vadd.f32 %v458_v26, %v456_v34  ;;  %v496_v48 = vstv %s1153_s6  ;;  %v499_v49 = vstv %s1155_s7 }
  0x76   :  { %v474_v46 = vadd.f32 %v473_v32, %v471_v39  ;;  %v486_v47 = vadd.f32 %v485_v41, %v482_v40  ;;  %v688_v50 = vpop.eup %687  ;;  %v497_v52 = vmul.f32 %v496_v48, %v790_v0  ;;  %v500_v53 = vmul.f32 %v795_v1, %v499_v49 }
  0x77   :  { %v404_v51 = vadd.f32 %v403_v43, %v389_v42  ;;  %693 = vtanh.f32 %v459_v44  ;;  %v418_v54 = vmul.f32 %v688_v50, %v417_v18  ;;  %v503_v56 = vstv %s1161_s8 }
  0x78   :  { %695 = vtanh.f32 %v474_v46  ;;  %v489_v55 = vadd.f32 %v488_v45, %v486_v47  ;;  %v501_v57 = vadd.f32 %v500_v53, %v497_v52  ;;  %v447_v60 = vstv %s1167_s2 }
  0x79   :  { %v419_v59 = vadd.f32 %v418_v54, %v404_v51  ;;  %v462_v0 = vstv %s625_s9  ;;  %v477_v4 = vstv %s629_s10  ;;  %v492_v8 = vstv %s633_s11 }
  0x7a   :  { %v690_v58 = vpop.eup %689  ;;  %697 = vtanh.f32 %v489_v55  ;;  %v504_v62 = vadd.f32 %v503_v56, %v501_v57  ;;  %v507_v13 = vstv %s637_s12  ;;  %v511_v18 = vstv %s1192_s3 }
  0x7b   :  { %v433_v61 = vmul.f32 %v690_v58, %v432_v38 }
  0x7c   :  { %v692_v63 = vpop.eup %691  ;;  %699 = vtanh.f32 %v504_v62 }
  0x7d   :  { %v434_v2 = vadd.f32 %v433_v61, %v419_v59  ;;  %v448_v3 = vmul.f32 %v692_v63, %v447_v60 }
  0x7f   :  { %v449_v1 = vadd.f32 %v448_v3, %v434_v2 }
  0x81   :  { %v694_v5 = vpop.eup %693 }
  0x82   :  { %v696_v6 = vpop.eup %695  ;;  %v463_v7 = vmul.f32 %v694_v5, %v462_v0 }
  0x83   :  { %v478_v9 = vmul.f32 %v696_v6, %v477_v4 }
  0x84   :  { %v698_v10 = vpop.eup %697  ;;  %v464_v11 = vadd.f32 %v463_v7, %v449_v1 }
  0x85   :  { %v493_v12 = vmul.f32 %v698_v10, %v492_v8 }
  0x86   :  { %v479_v14 = vadd.f32 %v478_v9, %v464_v11  ;;  %v700_v15 = vpop.eup %699 }
  0x87   :  { %v508_v17 = vmul.f32 %v700_v15, %v507_v13 }
  0x88   :  { %v494_v16 = vadd.f32 %v493_v12, %v479_v14 }
  0x8a   :  { %v509_v19 = vadd.f32 %v508_v17, %v494_v16 }
  0x8c   :  { %v512_v20 = vadd.f32 %v511_v18, %v509_v19 }
  0x8e   :  { %513 = vst [vmem:[%s1194_s5] sm:$0xff] %v512_v20 }
  0x8f   :  { %518 = vsyncpa [#allocation4], 1 }
  0x90   :  { %519 = vsyncpa [#allocation6], 1 }

</bundles_post_ra>
